<compile_context>
chip_gen: v6e
topology: v6e:2x2x1
jax: 0.10.0
libtpu: 0.0.40
codegen_flags: <defaults>
</compile_context>

<pallas_src>
import functools

import jax
import jax.numpy as jnp
from jax.experimental import pallas as pl
from jax.experimental.pallas import tpu as pltpu

HIDDEN = 64                       # module hard-codes 64-wide hidden layers
FUSED_H = 2 * HIDDEN              # actor||critic fused hidden width (=128, lane aligned)
OUT_LANES = 8                     # output slab: col0=logp, col1=value, col2=entropy


def _round_up(n, m):
    return ((n + m - 1) // m) * m


def _actor_critic_kernel(xs_ref, w1_ref, w2_ref, w3_ref, b_ref, out_ref,
                         *, state_dim, value_col):
    xa = xs_ref[...]                                    # (TB, S+1) f32; last col = bitcast action
    x = xa[:, :state_dim]                               # (TB, S)   f32
    a = pltpu.bitcast(xa[:, state_dim:state_dim + 1], jnp.int32)   # (TB, 1) int32
    b = b_ref[...]                                      # (3, 128)  f32 packed biases

    # ---- fused actor||critic MLP: bf16 MXU operands, f32 accumulate ----
    h1 = jnp.tanh(jnp.dot(x.astype(jnp.bfloat16), w1_ref[...],
                          preferred_element_type=jnp.float32) + b[0:1, :])    # (TB,128)
    h2 = jnp.tanh(jnp.dot(h1.astype(jnp.bfloat16), w2_ref[...],
                          preferred_element_type=jnp.float32) + b[1:2, :])    # (TB,128)
    y3 = jnp.dot(h2.astype(jnp.bfloat16), w3_ref[...],
                 preferred_element_type=jnp.float32) + b[2:3, :]              # (TB,128)
    # y3: cols [0, A) = actor logits, cols [A, value_col) = -1e30 (padded),
    #     col value_col = critic value.

    col = jax.lax.broadcasted_iota(jnp.int32, y3.shape, 1)
    # exclude the value lane from the softmax (padded lanes already at -1e30)
    logits = jnp.where(col == value_col, jnp.float32(-1e30), y3)

    m = jnp.max(logits, axis=-1, keepdims=True)
    z = logits - m
    ez = jnp.exp(z)
    denom = jnp.sum(ez, axis=-1, keepdims=True)
    log_probs = z - jnp.log(denom)                      # (TB, 128)
    probs = ez * pl.reciprocal(denom, approx=True)      # reuse ez: no 2nd exp pass
    # padded lanes: ez == 0 exactly -> probs == 0, probs*log_probs == 0 (finite)

    onehot = (col == a).astype(jnp.float32)             # (TB, 128)
    logp = jnp.sum(onehot * log_probs, axis=-1, keepdims=True)    # (TB, 1)
    ent = -jnp.sum(probs * log_probs, axis=-1, keepdims=True)     # (TB, 1)
    value = y3[:, value_col:value_col + 1]                        # (TB, 1)

    # narrow lane-dense output slab (8 lanes): col0=logp, col1=value, col2=entropy
    col8 = jax.lax.broadcasted_iota(jnp.int32, (logp.shape[0], OUT_LANES), 1)
    out_ref[...] = jnp.where(col8 == 0, logp,
                   jnp.where(col8 == 1, value,
                   jnp.where(col8 == 2, ent, 0.0)))


def pack_fused_params(p):
    """Host-side packing of the 12 PyTorch-style tensors into 4 fused arrays."""
    H = HIDDEN
    action_dim = p["wa3"].shape[1]
    assert action_dim + 1 <= FUSED_H, (
        "fused bias packing assumes action_dim <= 127 (value lane is col 127)")
    out_w = FUSED_H
    value_col = out_w - 1

    # layer 1: x @ [wa1 | wc1]  -> (B, 128)
    w1 = jnp.concatenate([p["wa1"], p["wc1"]], axis=1)                 # (S, 128)
    # layer 2: block-diagonal [[wa2, 0], [0, wc2]]                      (128, 128)
    w2 = jnp.zeros((FUSED_H, FUSED_H), jnp.float32)
    w2 = w2.at[:H, :H].set(p["wa2"]).at[H:, H:].set(p["wc2"])
    # layer 3: actor logits in cols [0, A), critic value in last col    (128, 128)
    w3 = jnp.zeros((FUSED_H, out_w), jnp.float32)
    w3 = w3.at[:H, :action_dim].set(p["wa3"])
    w3 = w3.at[H:, value_col:value_col + 1].set(p["wc3"])

    b1 = jnp.concatenate([p["ba1"], p["bc1"]], axis=1)                 # (1, 128)
    b2 = jnp.concatenate([p["ba2"], p["bc2"]], axis=1)                 # (1, 128)
    b3 = jnp.full((1, out_w), -1e30, jnp.float32)                      # pad lanes
    b3 = b3.at[0, :action_dim].set(p["ba3"][0])
    b3 = b3.at[0, value_col].set(p["bc3"][0, 0])
    bias = jnp.concatenate([b1, b2, b3], axis=0)                       # (3, 128)

    # weights in bf16 (MXU-native); biases / all VPU math stay f32
    return {"w1": w1.astype(jnp.bfloat16),
            "w2": w2.astype(jnp.bfloat16),
            "w3": w3.astype(jnp.bfloat16),
            "bias": bias}


@jax.jit
def actor_critic_evaluate(state, action, fused):
    """state: (B, S) f32, action: (B,) int, fused: dict from pack_fused_params."""
    w1, w2, w3, bias = fused["w1"], fused["w2"], fused["w3"], fused["bias"]
    B, S = state.shape
    out_w = w3.shape[1]
    value_col = out_w - 1

    # Batch tile: multiple of 8 sublanes, capped at 1024 rows; sized so the grid
    # has >= 2 steps whenever B > 8, letting v7x's two TensorCores split the
    # batch via dimension_semantics=("parallel",). VMEM per tile is < ~6 MB.
    tb = min(1024, _round_up(max(B // 2, 8), 8))
    b_pad = _round_up(B, tb)

    # Pack bitcast(action) as the trailing column of the state tile: one dense
    # DMA per grid step instead of an extra strided (tb,1) int32 transfer.
    act_f = jax.lax.bitcast_convert_type(action.astype(jnp.int32), jnp.float32)
    xs = jnp.concatenate([state.astype(jnp.float32), act_f.reshape(B, 1)], axis=1)
    if b_pad != B:
        xs = jnp.zeros((b_pad, S + 1), jnp.float32).at[:B].set(xs)

    kernel = functools.partial(_actor_critic_kernel,
                               state_dim=S, value_col=value_col)

    out = pl.pallas_call(
        kernel,
        out_shape=jax.ShapeDtypeStruct((b_pad, OUT_LANES), jnp.float32),
        grid=(b_pad // tb,),
        in_specs=[
            pl.BlockSpec((tb, S + 1), lambda i: (i, 0)),      # state||action tile
            pl.BlockSpec(w1.shape, lambda i: (0, 0)),         # weights: VMEM-resident
            pl.BlockSpec(w2.shape, lambda i: (0, 0)),
            pl.BlockSpec(w3.shape, lambda i: (0, 0)),
            pl.BlockSpec(bias.shape, lambda i: (0, 0)),
        ],
        out_specs=pl.BlockSpec((tb, OUT_LANES), lambda i: (i, 0)),
        compiler_params=pltpu.CompilerParams(
            dimension_semantics=("parallel",)),               # megacore on v7x
    )(xs, w1, w2, w3, bias)

    logp = out[:B, 0]
    value = out[:B, 1:2]
    entropy = out[:B, 2]
    return logp, value, entropy


def init_params(key, state_dim, action_dim, hidden=HIDDEN):
    """Deterministic synthetic init (uniform, like PyTorch's default scale)."""
    ks = jax.random.split(key, 12)

    def lin(kw, kb, fan_in, fan_out):
        bound = 1.0 / jnp.sqrt(fan_in)
        w = jax.random.uniform(kw, (fan_in, fan_out), jnp.float32, -bound, bound)
        b = jax.random.uniform(kb, (1, fan_out), jnp.float32, -bound, bound)
        return w, b

    wa1, ba1 = lin(ks[0], ks[1], state_dim, hidden)
    wa2, ba2 = lin(ks[2], ks[3], hidden, hidden)
    wa3, ba3 = lin(ks[4], ks[5], hidden, action_dim)
    wc1, bc1 = lin(ks[6], ks[7], state_dim, hidden)
    wc2, bc2 = lin(ks[8], ks[9], hidden, hidden)
    wc3, bc3 = lin(ks[10], ks[11], hidden, 1)
    return dict(wa1=wa1, ba1=ba1, wa2=wa2, ba2=ba2, wa3=wa3, ba3=ba3,
                wc1=wc1, bc1=bc1, wc2=wc2, bc2=bc2, wc3=wc3, bc3=bc3)


def _reference(state, action, p):
    """Pure-JAX f32 reference mirroring the PyTorch evaluate()."""
    h = jnp.tanh(state @ p["wa1"] + p["ba1"])
    h = jnp.tanh(h @ p["wa2"] + p["ba2"])
    logits = h @ p["wa3"] + p["ba3"]
    logp_all = jax.nn.log_softmax(logits, axis=-1)
    probs = jnp.exp(logp_all)
    logp = jnp.take_along_axis(logp_all, action[:, None], axis=-1)[:, 0]
    ent = -jnp.sum(probs * logp_all, axis=-1)
    hc = jnp.tanh(state @ p["wc1"] + p["bc1"])
    hc = jnp.tanh(hc @ p["wc2"] + p["bc2"])
    val = hc @ p["wc3"] + p["bc3"]
    return logp, val, ent


if __name__ == "__main__":
    B, STATE_DIM, ACTION_DIM = 8, 16, 4

    key = jax.random.PRNGKey(0)
    k_state, k_action, k_params = jax.random.split(key, 3)

    state = jax.random.normal(k_state, (B, STATE_DIM), jnp.float32)
    action = jax.random.randint(k_action, (B,), 0, ACTION_DIM, jnp.int32)
    params = init_params(k_params, STATE_DIM, ACTION_DIM)
    fused = pack_fused_params(params)

    logp, value, ent = actor_critic_evaluate(state, action, fused)
    jax.block_until_ready((logp, value, ent))

    # sanity check against pure-JAX f32 reference (bf16 MXU -> relaxed tolerance)
    r_logp, r_val, r_ent = _reference(state, action, params)
    assert jnp.allclose(logp, r_logp, atol=5e-2), "logprob mismatch"
    assert jnp.allclose(value, r_val, atol=5e-2), "value mismatch"
    assert jnp.allclose(ent, r_ent, atol=5e-2), "entropy mismatch"

    print("KERNEL_OK")
</pallas_src>

<mosaic_0001>
module attributes {stable_mosaic.version = 11 : i64} {
  func.func @_actor_critic_kernel(%arg0: i32, %arg1: memref<8x17xf32, #tpu.memory_space<vmem>>, %arg2: memref<16x128xbf16, #tpu.memory_space<vmem>>, %arg3: memref<128x128xbf16, #tpu.memory_space<vmem>>, %arg4: memref<128x128xbf16, #tpu.memory_space<vmem>>, %arg5: memref<3x128xf32, #tpu.memory_space<vmem>>, %arg6: memref<8x8xf32, #tpu.memory_space<vmem>>) attributes {dimension_semantics = [#tpu.dimension_semantics<parallel>], iteration_bounds = array<i64: 1>, scalar_prefetch = 0 : i64, scratch_operands = 0 : i64, tpu.core_type = #tpu.core_type<tc>, window_params = [{transform_indices = @transform_0, window_bounds = array<i64: 8, 17>}, {pipeline_mode = #tpu.pipeline_mode<synchronous>, transform_indices = @transform_1, window_bounds = array<i64: 16, 128>}, {pipeline_mode = #tpu.pipeline_mode<synchronous>, transform_indices = @transform_2, window_bounds = array<i64: 128, 128>}, {pipeline_mode = #tpu.pipeline_mode<synchronous>, transform_indices = @transform_3, window_bounds = array<i64: 128, 128>}, {pipeline_mode = #tpu.pipeline_mode<synchronous>, transform_indices = @transform_4, window_bounds = array<i64: 3, 128>}, {transform_indices = @transform_5, window_bounds = array<i64: 8, 8>}]} {
    %c0 = arith.constant 0 : index
    %c0_0 = arith.constant 0 : index
    %0 = vector.load %arg1[%c0, %c0_0] : memref<8x17xf32, #tpu.memory_space<vmem>>, vector<8x17xf32>
    %1 = vector.extract_strided_slice %0 {offsets = [0, 0], sizes = [8, 16], strides = [1, 1]} : vector<8x17xf32> to vector<8x16xf32>
    %2 = vector.extract_strided_slice %0 {offsets = [0, 16], sizes = [8, 1], strides = [1, 1]} : vector<8x17xf32> to vector<8x1xf32>
    %3 = tpu.bitcast %2 : vector<8x1xf32> -> vector<8x1xi32>
    %c0_1 = arith.constant 0 : index
    %c0_2 = arith.constant 0 : index
    %4 = vector.load %arg5[%c0_1, %c0_2] : memref<3x128xf32, #tpu.memory_space<vmem>>, vector<3x128xf32>
    %5 = arith.truncf %1 : vector<8x16xf32> to vector<8x16xbf16>
    %c0_3 = arith.constant 0 : index
    %c0_4 = arith.constant 0 : index
    %6 = vector.load %arg2[%c0_3, %c0_4] : memref<16x128xbf16, #tpu.memory_space<vmem>>, vector<16x128xbf16>
    %cst = arith.constant dense<0.000000e+00> : vector<8x128xf32>
    %7 = tpu.matmul %5, %6, %cst {dimension_numbers = #tpu.dot_dimension_numbers<[1], [0], [0], [1], [0, 0, 1, 1], [], []>} : vector<8x16xbf16>, vector<16x128xbf16>, vector<8x128xf32> -> vector<8x128xf32>
    %8 = vector.extract_strided_slice %4 {offsets = [0, 0], sizes = [1, 128], strides = [1, 1]} : vector<3x128xf32> to vector<1x128xf32>
    %9 = vector.broadcast %8 : vector<1x128xf32> to vector<8x128xf32>
    %10 = arith.addf %7, %9 : vector<8x128xf32>
    %11 = math.tanh %10 : vector<8x128xf32>
    %12 = arith.truncf %11 : vector<8x128xf32> to vector<8x128xbf16>
    %c0_5 = arith.constant 0 : index
    %c0_6 = arith.constant 0 : index
    %13 = vector.load %arg3[%c0_5, %c0_6] : memref<128x128xbf16, #tpu.memory_space<vmem>>, vector<128x128xbf16>
    %cst_7 = arith.constant dense<0.000000e+00> : vector<8x128xf32>
    %14 = tpu.matmul %12, %13, %cst_7 {dimension_numbers = #tpu.dot_dimension_numbers<[1], [0], [0], [1], [0, 0, 1, 1], [], []>} : vector<8x128xbf16>, vector<128x128xbf16>, vector<8x128xf32> -> vector<8x128xf32>
    %15 = vector.extract_strided_slice %4 {offsets = [1, 0], sizes = [1, 128], strides = [1, 1]} : vector<3x128xf32> to vector<1x128xf32>
    %16 = vector.broadcast %15 : vector<1x128xf32> to vector<8x128xf32>
    %17 = arith.addf %14, %16 : vector<8x128xf32>
    %18 = math.tanh %17 : vector<8x128xf32>
    %19 = arith.truncf %18 : vector<8x128xf32> to vector<8x128xbf16>
    %c0_8 = arith.constant 0 : index
    %c0_9 = arith.constant 0 : index
    %20 = vector.load %arg4[%c0_8, %c0_9] : memref<128x128xbf16, #tpu.memory_space<vmem>>, vector<128x128xbf16>
    %cst_10 = arith.constant dense<0.000000e+00> : vector<8x128xf32>
    %21 = tpu.matmul %19, %20, %cst_10 {dimension_numbers = #tpu.dot_dimension_numbers<[1], [0], [0], [1], [0, 0, 1, 1], [], []>} : vector<8x128xbf16>, vector<128x128xbf16>, vector<8x128xf32> -> vector<8x128xf32>
    %22 = vector.extract_strided_slice %4 {offsets = [2, 0], sizes = [1, 128], strides = [1, 1]} : vector<3x128xf32> to vector<1x128xf32>
    %23 = vector.broadcast %22 : vector<1x128xf32> to vector<8x128xf32>
    %24 = arith.addf %21, %23 : vector<8x128xf32>
    %25 = tpu.iota {dimensions = array<i32: 1>} : vector<8x128xi32>
    %c127_i32 = arith.constant 127 : i32
    %26 = vector.broadcast %c127_i32 : i32 to vector<8x128xi32>
    %27 = arith.cmpi eq, %25, %26 : vector<8x128xi32>
    %cst_11 = arith.constant -1.000000e+30 : f32
    %28 = vector.broadcast %cst_11 : f32 to vector<8x128xf32>
    %29 = arith.select %27, %28, %24 : vector<8x128xi1>, vector<8x128xf32>
    %cst_12 = arith.constant dense<0xFF800000> : vector<8xf32>
    %30 = vector.multi_reduction <maximumf>, %29, %cst_12 [1] : vector<8x128xf32> to vector<8xf32>
    %31 = vector.shape_cast %30 : vector<8xf32> to vector<8x1xf32>
    %32 = vector.broadcast %31 : vector<8x1xf32> to vector<8x128xf32>
    %33 = arith.subf %29, %32 : vector<8x128xf32>
    %34 = math.exp %33 : vector<8x128xf32>
    %cst_13 = arith.constant dense<0.000000e+00> : vector<8xf32>
    %35 = vector.multi_reduction <add>, %34, %cst_13 [1] : vector<8x128xf32> to vector<8xf32>
    %36 = vector.shape_cast %35 : vector<8xf32> to vector<8x1xf32>
    %37 = math.log %36 : vector<8x1xf32>
    %38 = vector.broadcast %37 : vector<8x1xf32> to vector<8x128xf32>
    %39 = arith.subf %33, %38 : vector<8x128xf32>
    %40 = tpu.reciprocal %36 {approx = true} : vector<8x1xf32> -> vector<8x1xf32>
    %41 = vector.broadcast %40 : vector<8x1xf32> to vector<8x128xf32>
    %42 = arith.mulf %34, %41 : vector<8x128xf32>
    %43 = vector.broadcast %3 : vector<8x1xi32> to vector<8x128xi32>
    %44 = arith.cmpi eq, %25, %43 : vector<8x128xi32>
    %45 = arith.extui %44 : vector<8x128xi1> to vector<8x128xi32>
    %46 = arith.sitofp %45 : vector<8x128xi32> to vector<8x128xf32>
    %47 = arith.mulf %46, %39 : vector<8x128xf32>
    %cst_14 = arith.constant dense<0.000000e+00> : vector<8xf32>
    %48 = vector.multi_reduction <add>, %47, %cst_14 [1] : vector<8x128xf32> to vector<8xf32>
    %49 = vector.shape_cast %48 : vector<8xf32> to vector<8x1xf32>
    %50 = arith.mulf %42, %39 : vector<8x128xf32>
    %cst_15 = arith.constant dense<0.000000e+00> : vector<8xf32>
    %51 = vector.multi_reduction <add>, %50, %cst_15 [1] : vector<8x128xf32> to vector<8xf32>
    %52 = vector.shape_cast %51 : vector<8xf32> to vector<8x1xf32>
    %cst_16 = arith.constant 0.000000e+00 : f32
    %53 = vector.broadcast %cst_16 : f32 to vector<8x1xf32>
    %54 = arith.subf %53, %52 : vector<8x1xf32>
    %55 = vector.extract_strided_slice %24 {offsets = [0, 127], sizes = [8, 1], strides = [1, 1]} : vector<8x128xf32> to vector<8x1xf32>
    %56 = tpu.iota {dimensions = array<i32: 1>} : vector<8x8xi32>
    %c0_i32 = arith.constant 0 : i32
    %57 = vector.broadcast %c0_i32 : i32 to vector<8x8xi32>
    %58 = arith.cmpi eq, %56, %57 : vector<8x8xi32>
    %c1_i32 = arith.constant 1 : i32
    %59 = vector.broadcast %c1_i32 : i32 to vector<8x8xi32>
    %60 = arith.cmpi eq, %56, %59 : vector<8x8xi32>
    %c2_i32 = arith.constant 2 : i32
    %61 = vector.broadcast %c2_i32 : i32 to vector<8x8xi32>
    %62 = arith.cmpi eq, %56, %61 : vector<8x8xi32>
    %cst_17 = arith.constant 0.000000e+00 : f32
    %63 = vector.shape_cast %54 : vector<8x1xf32> to vector<8x1xf32>
    %64 = vector.broadcast %63 : vector<8x1xf32> to vector<8x8xf32>
    %65 = vector.broadcast %cst_17 : f32 to vector<8x8xf32>
    %66 = arith.select %62, %64, %65 : vector<8x8xi1>, vector<8x8xf32>
    %67 = vector.shape_cast %55 : vector<8x1xf32> to vector<8x1xf32>
    %68 = vector.broadcast %67 : vector<8x1xf32> to vector<8x8xf32>
    %69 = arith.select %60, %68, %66 : vector<8x8xi1>, vector<8x8xf32>
    %70 = vector.shape_cast %49 : vector<8x1xf32> to vector<8x1xf32>
    %71 = vector.broadcast %70 : vector<8x1xf32> to vector<8x8xf32>
    %72 = arith.select %58, %71, %69 : vector<8x8xi1>, vector<8x8xf32>
    %c0_18 = arith.constant 0 : index
    %c0_19 = arith.constant 0 : index
    %73 = vector.load %arg6[%c0_18, %c0_19] : memref<8x8xf32, #tpu.memory_space<vmem>>, vector<8x8xf32>
    tpu.vector_store %arg6[%c0_18, %c0_19], %72 {strides = array<i32>} : memref<8x8xf32, #tpu.memory_space<vmem>>, vector<8x8xf32>,
    return
  }
  func.func @transform_0(%arg0: i32) -> (i32, i32) {
    %c0_i32 = arith.constant 0 : i32
    %c0_i32_0 = arith.constant 0 : i32
    return %arg0, %c0_i32 : i32, i32
  }
  func.func @transform_1(%arg0: i32) -> (i32, i32) {
    %c0_i32 = arith.constant 0 : i32
    %c0_i32_0 = arith.constant 0 : i32
    %c0_i32_1 = arith.constant 0 : i32
    return %c0_i32, %c0_i32_0 : i32, i32
  }
  func.func @transform_2(%arg0: i32) -> (i32, i32) {
    %c0_i32 = arith.constant 0 : i32
    %c0_i32_0 = arith.constant 0 : i32
    %c0_i32_1 = arith.constant 0 : i32
    return %c0_i32, %c0_i32_0 : i32, i32
  }
  func.func @transform_3(%arg0: i32) -> (i32, i32) {
    %c0_i32 = arith.constant 0 : i32
    %c0_i32_0 = arith.constant 0 : i32
    %c0_i32_1 = arith.constant 0 : i32
    return %c0_i32, %c0_i32_0 : i32, i32
  }
  func.func @transform_4(%arg0: i32) -> (i32, i32) {
    %c0_i32 = arith.constant 0 : i32
    %c0_i32_0 = arith.constant 0 : i32
    %c0_i32_1 = arith.constant 0 : i32
    return %c0_i32, %c0_i32_0 : i32, i32
  }
  func.func @transform_5(%arg0: i32) -> (i32, i32) {
    %c0_i32 = arith.constant 0 : i32
    %c0_i32_0 = arith.constant 0 : i32
    return %arg0, %c0_i32 : i32, i32
  }
}

</mosaic_0001>

<bundles_post_ra>
// kernel: actor_critic_evaluate.1
= control target key start
LH: loop header
LB: loop body
LE: loop exit
PB: predicated region body
PF: predicated region fallthrough
CT: control target
= control target key end

     0   :  { %10 = vsyncpa [#allocation3], 0  ;;  %s628_s0 = inlined_call_operand.vmem [shape: f32[8,17], index: 0, kind: input, shape index: {}]   ;;  %s629_s1 = inlined_call_operand.vmem [shape: bf16[16,128], index: 1, kind: input, shape index: {}]   ;;  %s630_s2 = inlined_call_operand.hbm [shape: bf16[128,128], index: 2, kind: input, shape index: {}]   ;;  %s631_s3 = inlined_call_operand.hbm [shape: bf16[128,128], index: 3, kind: input, shape index: {}]   ;;  %s632_s4 = inlined_call_operand.vmem [shape: f32[3,128], index: 4, kind: input, shape index: {}]   ;;  %s633_s5 = inlined_call_operand.vmem [shape: f32[8,8], index: 5, kind: output, shape index: {}]  }
   0x1   :  { %11 = vsyncpa [#allocation5], 0  ;;  %s543_s18 = smov [#allocation2]  }
   0x2   :  { %s21_s19 = sshll.u32 %s543_s18, 4  ;;  %s22_s19 = int_to_ptr.vmem [resolvable:$true] %s21_s19 }
   0x3   :  { %s507_s20 = scalar_lea.vmem %s22_s19, 1024  ;;  %p512_p1 = scmp.lt.s32.totalorder %s22_s19, %s22_s19 }
   0x4   :  { %p508_p0 = scmp.ne.s32.totalorder %s22_s19, %s507_s20  ;;  %p513_p2 = scmp.lt.s32.totalorder %s507_s20, %s507_s20 }
   0x6   :  { %p514_p3 = por %p513_p2, %p512_p1 }
   0x8   :  { %p515_p4 = pnand %p514_p3, %p508_p0 }
   0xa   :  { %518 = shalt.err (!%p515_p4)
}
   0xb   :  { %s544_s21 = smov 64   ;;  %s545_s22 = smov 4  }
   0xc   :  { %27 = dma.hbm_to_vmem [thread:$0]  %s630_s2, 1024, %s22_s19, [#allocation3], %s544_s21, %s544_s21, %s545_s22  }
   0xd   :  { %s546_s25 = smov [#allocation4]  }
   0xe   :  { %s33_s26 = sshll.u32 %s546_s25, 4  ;;  %s34_s26 = int_to_ptr.vmem [resolvable:$true] %s33_s26 }
   0xf   :  { %s527_s27 = scalar_lea.vmem %s34_s26, 1024  ;;  %p532_p6 = scmp.lt.s32.totalorder %s34_s26, %s34_s26 }
  0x10   :  { %p528_p5 = scmp.ne.s32.totalorder %s34_s26, %s527_s27  ;;  %p533_p7 = scmp.lt.s32.totalorder %s527_s27, %s527_s27 }
  0x12   :  { %p534_p8 = por %p533_p7, %p532_p6 }
  0x14   :  { %p535_p9 = pnand %p534_p8, %p528_p5 }
  0x16   :  { %538 = shalt.err (!%p535_p9)
}
  0x17   :  { %39 = dma.hbm_to_vmem [thread:$0]  %s631_s3, 1024, %s34_s26, [#allocation5], %s544_s21, %s544_s21, %s545_s22  }
  0x18   :  { %539 = dma.done.wait [#allocation3], 1024  }
  0x19   :  { %540 = vsyncadd [#allocation3], 4294966272 }
  0x1a   :  { %541 = dma.done.wait [#allocation5], 1024  }
  0x1b   :  { %542 = vsyncadd [#allocation5], 4294966272  ;;  %v547_v0 = vmov 0.0   ;;  %vm548_vm0 = vmmov 0   ;;  %v472_v1 = vld [vmem:[%s629_s1] sm:$0xff]   ;;  %vm65_vm1 = vcmask 130048   ;;  %v55_v15 = vlaneseq }
  0x1c   :  { %416 = vmatprep.subr.bf16.mxu0 %v547_v0  ;;  %418 = vmatprep.mubr.msk.bf16.mxu0 %vm548_vm0, %v547_v0  ;;  %v599_v2 = vld [vmem:[%s628_s0] sm:$0xff]  ;;  %v473_v4 = vld [vmem:[#allocation2 + $0x38] sm:$0xff]   ;;  %v474_v5 = vld [vmem:[#allocation2 + $0x30] sm:$0xff]   ;;  %v549_v50 = vmov 16   ;;  %v550_v55 = vmov 127   ;;  %vm369_vm7 = vcmask 64512  }
  0x1d   :  { %422 = vmatprep.subr.bf16.mxu1 %v547_v0  ;;  %438 = vmatprep.mubr.msk.bf16.mxu1 %vm548_vm0, %v547_v0  ;;  %v52_v3 = vpack.c.bf16 %v599_v2, %v599_v2  ;;  %v475_v6 = vld [vmem:[#allocation2 + $0x28] sm:$0xff]   ;;  %v476_v7 = vld [vmem:[#allocation2 + $0x20] sm:$0xff]   ;;  %v477_v8 = vld [vmem:[#allocation2 + $0x18] sm:$0xff]   ;;  %v56_v16 = vshrl.u32 %v55_v15, 7  ;;  %v330_v42 = vand.u32 127, %v55_v15 }
  0x1e   :  { %417 = vmatpush3.bf16.msra.mxu0 %v472_v1  ;;  %423 = vmatpush3.bf16.msra.mxu1 %v473_v4  ;;  %v478_v9 = vld [vmem:[#allocation2 + $0x10] sm:$0xff]   ;;  %v479_v10 = vld [vmem:[#allocation2 + $0x8] sm:$0xff]   ;;  %v480_v11 = vld [vmem:[#allocation2] sm:$0xff]  }
  0x1f   :  { %442 = vmatprep.subr.bf16.mxu0 %v547_v0  ;;  %424 = vmatprep.subr.bf16.mxu1 %v547_v0  ;;  %v481_v12 = vld [vmem:[#allocation4 + $0x38] sm:$0xff]   ;;  %v482_v13 = vld [vmem:[#allocation4 + $0x30] sm:$0xff]   ;;  %v483_v14 = vld [vmem:[#allocation4 + $0x28] sm:$0xff]   ;;  %v57_v17 = vsub.s32 0, %v56_v16  ;;  %v129_v32 = vsub.s32 1, %v56_v16  ;;  %v239_v41 = vsub.s32 2, %v56_v16 }
  0x20   :  { %v51_v18 = vld [vmem:[%s632_s4] sm:$0x7]  ;;  %v485_v28 = vld [vmem:[#allocation4 + $0x18] sm:$0xff]   ;;  %v486_v29 = vld [vmem:[#allocation4 + $0x10] sm:$0xff]   ;;  %vm331_vm2 = vcmp.eq.s32.totalorder %v330_v42, 127  ;;  %470 = vset.pattern.permute.xlu1 %v549_v50  ;;  %471 = vset.pattern.permute.xlu0 %v550_v55  ;;  %vm360_vm4 = vcmp.eq.s32.totalorder %v330_v42, 2 }
  0x21   :  { %419 = vmatmul.mubr.msk.bf16.vlgmr.msra.gmra.mxu0 %vm65_vm1, %v52_v3  ;;  %v58_v19 = vrot.slane %v51_v18, %v57_v17  ;;  %v484_v27 = vld [vmem:[#allocation4 + $0x20] sm:$0xff]   ;;  %v487_v30 = vld [vmem:[#allocation4 + $0x8] sm:$0xff]   ;;  %v130_v33 = vrot.slane %v51_v18, %v129_v32  ;;  %v240_v43 = vrot.slane %v51_v18, %v239_v41  ;;  %346 = vperm.xlu1 %470, %v599_v2   ;;  %vm359_vm5 = vcmp.eq.s32.totalorder %v330_v42, 1 }
  0x22   :  { %458 = vmatprep.mubr.msk.bf16.mxu0 %vm548_vm0, %v547_v0  ;;  %425 = vmatpush3.bf16.msra.mxu1 %v474_v5  ;;  %v488_v31 = vld [vmem:[#allocation4] sm:$0xff]   ;;  %vm358_vm6 = vcmp.eq.s32.totalorder %v330_v42, 0 }
  0x23   :  { %426 = vmatprep.subr.bf16.mxu1 %v547_v0  ;;  %443 = vmatpush3.bf16.msra.mxu0 %v481_v12 }
  0x24   :  { %444 = vmatprep.subr.bf16.mxu0 %v547_v0 }
  0x26   :  { %427 = vmatpush3.bf16.msra.mxu1 %v475_v6 }
  0x27   :  { %428 = vmatprep.subr.bf16.mxu1 %v547_v0  ;;  %445 = vmatpush3.bf16.msra.mxu0 %v482_v13 }
  0x28   :  { %446 = vmatprep.subr.bf16.mxu0 %v547_v0 }
  0x2a   :  { %429 = vmatpush3.bf16.msra.mxu1 %v476_v7 }
  0x2b   :  { %430 = vmatprep.subr.bf16.mxu1 %v547_v0  ;;  %447 = vmatpush3.bf16.msra.mxu0 %v483_v14 }
  0x2c   :  { %448 = vmatprep.subr.bf16.mxu0 %v547_v0 }
  0x2e   :  { %431 = vmatpush3.bf16.msra.mxu1 %v477_v8 }
  0x2f   :  { %432 = vmatprep.subr.bf16.mxu1 %v547_v0  ;;  %449 = vmatpush3.bf16.msra.mxu0 %v484_v27 }
  0x30   :  { %450 = vmatprep.subr.bf16.mxu0 %v547_v0 }
  0x32   :  { %433 = vmatpush3.bf16.msra.mxu1 %v478_v9 }
  0x33   :  { %434 = vmatprep.subr.bf16.mxu1 %v547_v0  ;;  %451 = vmatpush3.bf16.msra.mxu0 %v485_v28 }
  0x34   :  { %452 = vmatprep.subr.bf16.mxu0 %v547_v0 }
  0x36   :  { %435 = vmatpush3.bf16.msra.mxu1 %v479_v10 }
  0x37   :  { %436 = vmatprep.subr.bf16.mxu1 %v547_v0  ;;  %453 = vmatpush3.bf16.msra.mxu0 %v486_v29 }
  0x38   :  { %454 = vmatprep.subr.bf16.mxu0 %v547_v0 }
  0x3a   :  { %437 = vmatpush3.bf16.msra.mxu1 %v480_v11 }
  0x3b   :  { %455 = vmatpush3.bf16.msra.mxu0 %v487_v30 }
  0x3c   :  { %456 = vmatprep.subr.bf16.mxu0 %v547_v0 }
  0x3f   :  { %457 = vmatpush3.bf16.msra.mxu0 %v488_v31 }
  0x9c   :  { %v347_v57 = vpop.permute.xlu1 %346 }
  0x9d   :  { %vm348_vm3 = vcmp.eq.s32.totalorder %v330_v42, %v347_v57 }
  0x9e   :  { %v395_v61 = vsel %vm348_vm3, 1.0, %v547_v0 }
  0xe1   :  { %v103_v20 = vpop.f32.mrf.mxu0 }
  0xe2   :  { %v104_v21 = vadd.f32 %v103_v20, %v58_v19 }
  0xe3   :  { %v420_v22 = vpop.f32.mrf.mxu0 }
  0xe4   :  { %489 = vtanh.f32 %v104_v21 }
  0xe5   :  { %v106_v23 = vpop.f32.mrf.mxu0 }
  0xe7   :  { %v421_v24 = vpop.f32.mrf.mxu0 }
  0xf1   :  { %v490_v25 = vpop.eup %489 }
  0xf2   :  { %v110_v26 = vpack.c.bf16 %v490_v25, %v490_v25 }
  0xf4   :  { %439 = vmatmul.mubr.bf16.vlgmr.msra.gmra.mxu1 %v110_v26 }
 0x1b4   :  { %v213_v34 = vpop.f32.mrf.mxu1 }
 0x1b5   :  { %v214_v35 = vadd.f32 %v213_v34, %v130_v33 }
 0x1b6   :  { %v440_v36 = vpop.f32.mrf.mxu1 }
 0x1b7   :  { %491 = vtanh.f32 %v214_v35 }
 0x1b8   :  { %v216_v37 = vpop.f32.mrf.mxu1 }
 0x1ba   :  { %v441_v38 = vpop.f32.mrf.mxu1 }
 0x1c4   :  { %v492_v39 = vpop.eup %491 }
 0x1c5   :  { %v220_v40 = vpack.c.bf16 %v492_v39, %v492_v39 }
 0x1c7   :  { %459 = vmatmul.mubr.bf16.vlgmr.msra.gmra.mxu0 %v220_v40 }
 0x287   :  { %v323_v44 = vpop.f32.mrf.mxu0 }
 0x288   :  { %v324_v45 = vadd.f32 %v323_v44, %v240_v43 }
 0x289   :  { %v460_v46 = vpop.f32.mrf.mxu0 }
 0x28a   :  { %v332_v47 = vsel %vm331_vm2, -1e+30, %v324_v45 }
 0x28b   :  { %333 = vmax.xlane.f32.xlu0 %v332_v47  ;;  %v326_v48 = vpop.f32.mrf.mxu0 }
 0x28d   :  { %v461_v49 = vpop.f32.mrf.mxu0 }
 0x314   :  { %v334_v51 = vpop.xlane.xlu0 %333 }
 0x315   :  { %v335_v52 = vsub.f32 %v332_v47, %v334_v51 }
 0x317   :  { %v336_v53 = vmul.f32 1.442695, %v335_v52 }
 0x319   :  { %493 = vpow2.f32 %v336_v53 }
 0x326   :  { %v494_v54 = vpop.eup %493 }
 0x327   :  { %338 = vadd.xlane.f32.xlu0 %v494_v54 }
 0x3b0   :  { %v339_v56 = vpop.xlane.xlu0 %338 }
 0x3b1   :  { %495 = vlog2.f32 %v339_v56 }
 0x3b2   :  { %497 = vrcp.f32 %v339_v56 }
 0x3be   :  { %v496_v58 = vpop.eup %495 }
 0x3bf   :  { %v498_v59 = vpop.eup %497  ;;  %v341_v60 = vmul.f32 0.6931472, %v496_v58 }
 0x3c0   :  { %v344_v63 = vmul.f32 %v498_v59, %v494_v54 }
 0x3c1   :  { %v342_v62 = vsub.f32 %v335_v52, %v341_v60 }
 0x3c3   :  { %v354_v1 = vmul.f32 %v344_v63, %v342_v62  ;;  %v351_v2 = vmul.f32 %v395_v61, %v342_v62 }
 0x3c5   :  { %355 = vadd.xlane.f32.xlu1 %v354_v1  ;;  %352 = vadd.xlane.f32.xlu0 %v351_v2 }
 0x3db   :  { %364 = vperm.xlu0 %471, %v324_v45  }
 0x44e   :  { %v356_v3 = vpop.xlane.xlu1 %355  ;;  %v353_v5 = vpop.xlane.xlu0 %352 }
 0x44f   :  { %v357_v4 = vsub.f32 0.0, %v356_v3 }
 0x451   :  { %v361_v6 = vsel %vm360_vm4, %v357_v4, 0.0 }
 0x456   :  { %v365_v7 = vpop.permute.xlu0 %364 }
 0x457   :  { %v367_v8 = vsel %vm359_vm5, %v365_v7, %v361_v6 }
 0x458   :  { %v368_v9 = vsel %vm358_vm6, %v353_v5, %v367_v8 }
 0x459   :  { %370 = vst.msk [vmem:[%s633_s5] sm:$0xff] %vm369_vm7, %v368_v9 }
 0x45a   :  { %375 = vsyncpa [#allocation3], 1 }
 0x45b   :  { %376 = vsyncpa [#allocation5], 1 }

</bundles_post_ra>
